<compile_context>
chip_gen: v7x
topology: tpu7x:2x2x1
jax: 0.10.0
libtpu: 0.0.40
codegen_flags: <defaults>
</compile_context>

<pallas_src>
import math

import jax
import jax.numpy as jnp
from jax.experimental import pallas as pl
from jax.experimental.pallas import tpu as pltpu


def _max_reduce_kernel(x_ref, o_ref):
    # x_ref: (bp, bc, bm) input tile.
    # o_ref: (bp, 1, bm) output tile, resident across the C grid axis.
    c = pl.program_id(2)
    partial = jnp.max(x_ref[...], axis=1, keepdims=True)

    @pl.when(c == 0)
    def _():
        o_ref[...] = partial

    @pl.when(c > 0)
    def _():
        o_ref[...] = jnp.maximum(o_ref[...], partial)


def _round_up(x: int, m: int) -> int:
    return ((x + m - 1) // m) * m


def _dtype_min(dtype):
    dtype = jnp.dtype(dtype)
    if jnp.issubdtype(dtype, jnp.floating):
        return float("-inf")
    if jnp.issubdtype(dtype, jnp.integer):
        return int(jnp.iinfo(dtype).min)
    if dtype == jnp.bool_:
        return False
    raise TypeError(f"Unsupported dtype for max reduction: {dtype}")


def max_along_dim(x: jax.Array, dim: int = 1) -> jax.Array:
    """Pallas equivalent of torch.Tensor.max(dim)[0] (values only) for any rank."""
    ndim = x.ndim
    if dim >= ndim:
        raise ValueError(
            f"Dimension {dim} out of range for input with {ndim} dimensions."
        )
    if dim < 0:
        dim += ndim
    if dim < 0:
        raise ValueError(f"Dimension {dim - ndim} out of range for input with {ndim} dimensions.")

    shape = x.shape
    out_shape = shape[:dim] + shape[dim + 1:]
    pre = int(math.prod(shape[:dim]))        # dims before the reduction axis
    C = int(shape[dim])                      # reduction size
    post = int(math.prod(shape[dim + 1:]))   # dims after -> lane-dense minor dim

    dtype = jnp.dtype(x.dtype)
    itemsize = dtype.itemsize
    pad_val = _dtype_min(dtype)

    x3 = x.reshape(pre, C, post)

    # ---------------- tile selection ----------------
    # Lane tile: multiple of 128, up to 512 lanes (amortizes ~0.35us/step overhead,
    # keeps stores unmasked).
    M_pad = _round_up(max(post, 1), 128)
    bm = min(M_pad, 512)
    M_pad = _round_up(M_pad, bm)

    # Channel tile: full C if it fits the per-buffer budget, otherwise a
    # sublane-pack-aligned chunk (8 f32 / 16 bf16 / 32 int8).
    sub = max(8, 32 // itemsize)
    budget = 2 * 1024 * 1024  # bytes per (single) input buffer; x2 for double-buffering
    bc_cap = max(sub, (budget // (bm * itemsize)) // sub * sub)
    if C <= bc_cap:
        bc, C_pad = C, C
    else:
        bc = bc_cap
        C_pad = _round_up(C, bc)

    # Batch blocking: pack several batch rows per step when C*post is small.
    per_batch_bytes = max(bc * bm * itemsize, 1)
    bp = max(1, min(pre, budget // per_batch_bytes))
    P_pad = _round_up(max(pre, 1), bp)

    # Pad with dtype-min: padding along C never changes the max; padded
    # rows/columns of pre/post are sliced off afterwards.
    pads = ((0, P_pad - pre), (0, C_pad - C), (0, M_pad - post))
    if any(p[1] for p in pads):
        x3 = jnp.pad(x3, pads, constant_values=pad_val)

    grid = (P_pad // bp, M_pad // bm, C_pad // bc)

    cost = pl.CostEstimate(
        flops=pre * max(C - 1, 0) * post,
        transcendentals=0,
        bytes_accessed=(pre * C * post + pre * post) * itemsize,
    )

    out3 = pl.pallas_call(
        _max_reduce_kernel,
        out_shape=jax.ShapeDtypeStruct((P_pad, 1, M_pad), dtype),
        grid_spec=pltpu.PrefetchScalarGridSpec(
            num_scalar_prefetch=0,
            grid=grid,
            in_specs=[
                pl.BlockSpec((bp, bc, bm), lambda p, m, c: (p, c, m)),
            ],
            # Output block index independent of c -> stays VMEM-resident across
            # the reduction axis.
            out_specs=pl.BlockSpec((bp, 1, bm), lambda p, m, c: (p, 0, m)),
        ),
        compiler_params=pltpu.CompilerParams(
            dimension_semantics=("parallel", "parallel", "arbitrary"),
            vmem_limit_bytes=32 * 1024 * 1024,
        ),
        cost_estimate=cost,
    )(x3)

    return out3[:pre, 0, :post].reshape(out_shape)


if __name__ == "__main__":
    key = jax.random.PRNGKey(0)
    # Small NCHW input consistent with the module's default dim=1 usage.
    x = jax.random.normal(key, (2, 4, 16, 16), dtype=jnp.float32)

    # Default module behavior: dim=1.
    y = max_along_dim(x, dim=1)
    jax.block_until_ready(y)
    y_ref = jnp.max(x, axis=1)
    assert y.shape == (2, 16, 16)
    assert jnp.allclose(y, y_ref), "Pallas max kernel mismatch vs reference (dim=1)"

    # Extra coverage for the previously-broken paths: dim=0, dim=2, negative dim.
    for d in (0, 2, -1):
        yd = max_along_dim(x, dim=d)
        jax.block_until_ready(yd)
        yd_ref = jnp.max(x, axis=d)
        assert yd.shape == yd_ref.shape
        assert jnp.allclose(yd, yd_ref), f"Pallas max kernel mismatch vs reference (dim={d})"

    print("KERNEL_OK")
</pallas_src>

<mosaic_0001>
module attributes {stable_mosaic.version = 11 : i64} {
  func.func @_max_reduce_kernel(%arg0: i32, %arg1: i32, %arg2: i32, %arg3: memref<2x4x256xf32, #tpu.memory_space<vmem>>, %arg4: memref<2x1x256xf32, #tpu.memory_space<vmem>>) attributes {dimension_semantics = [#tpu.dimension_semantics<parallel>, #tpu.dimension_semantics<parallel>, #tpu.dimension_semantics<arbitrary>], iteration_bounds = array<i64: 1, 1, 1>, scalar_prefetch = 0 : i64, scratch_operands = 0 : i64, tpu.core_type = #tpu.core_type<tc>, window_params = [{transform_indices = @transform_0, window_bounds = array<i64: 2, 4, 256>}, {transform_indices = @transform_1, window_bounds = array<i64: 2, 1, 256>}]} {
    %c0 = arith.constant 0 : index
    %c0_0 = arith.constant 0 : index
    %c0_1 = arith.constant 0 : index
    %0 = vector.load %arg3[%c0, %c0_0, %c0_1] : memref<2x4x256xf32, #tpu.memory_space<vmem>>, vector<2x4x256xf32>
    %cst = arith.constant dense<0xFF800000> : vector<2x256xf32>
    %1 = vector.multi_reduction <maximumf>, %0, %cst [1] : vector<2x4x256xf32> to vector<2x256xf32>
    %2 = vector.shape_cast %1 : vector<2x256xf32> to vector<2x1x256xf32>
    %c0_i32 = arith.constant 0 : i32
    %3 = arith.cmpi eq, %arg2, %c0_i32 : i32
    %4 = arith.extui %3 : i1 to i32
    %c0_i32_2 = arith.constant 0 : i32
    %5 = arith.cmpi ne, %4, %c0_i32_2 : i32
    scf.if %5 {
      %c0_5 = arith.constant 0 : index
      %c0_6 = arith.constant 0 : index
      %c0_7 = arith.constant 0 : index
      %9 = vector.load %arg4[%c0_5, %c0_6, %c0_7] : memref<2x1x256xf32, #tpu.memory_space<vmem>>, vector<2x1x256xf32>
      tpu.vector_store %arg4[%c0_5, %c0_6, %c0_7], %2 {strides = array<i32>} : memref<2x1x256xf32, #tpu.memory_space<vmem>>, vector<2x1x256xf32>,
    } else {
    }
    %c0_i32_3 = arith.constant 0 : i32
    %6 = arith.cmpi sgt, %arg2, %c0_i32_3 : i32
    %7 = arith.extui %6 : i1 to i32
    %c0_i32_4 = arith.constant 0 : i32
    %8 = arith.cmpi ne, %7, %c0_i32_4 : i32
    scf.if %8 {
      %c0_5 = arith.constant 0 : index
      %c0_6 = arith.constant 0 : index
      %c0_7 = arith.constant 0 : index
      %9 = vector.load %arg4[%c0_5, %c0_6, %c0_7] : memref<2x1x256xf32, #tpu.memory_space<vmem>>, vector<2x1x256xf32>
      %10 = arith.maximumf %9, %2 : vector<2x1x256xf32>
      %c0_8 = arith.constant 0 : index
      %c0_9 = arith.constant 0 : index
      %c0_10 = arith.constant 0 : index
      %11 = vector.load %arg4[%c0_8, %c0_9, %c0_10] : memref<2x1x256xf32, #tpu.memory_space<vmem>>, vector<2x1x256xf32>
      tpu.vector_store %arg4[%c0_8, %c0_9, %c0_10], %10 {strides = array<i32>} : memref<2x1x256xf32, #tpu.memory_space<vmem>>, vector<2x1x256xf32>,
    } else {
    }
    return
  }
  func.func @transform_0(%arg0: i32, %arg1: i32, %arg2: i32) -> (i32, i32, i32) {
    %c0_i32 = arith.constant 0 : i32
    return %arg0, %arg2, %arg1 : i32, i32, i32
  }
  func.func @transform_1(%arg0: i32, %arg1: i32, %arg2: i32) -> (i32, i32, i32) {
    %c0_i32 = arith.constant 0 : i32
    %c0_i32_0 = arith.constant 0 : i32
    return %arg0, %c0_i32, %arg1 : i32, i32, i32
  }
}

</mosaic_0001>

<bundles_post_ra>
// kernel: tpu_custom_call.1
= control target key start
LH: loop header
LB: loop body
LE: loop exit
PB: predicated region body
PF: predicated region fallthrough
CT: control target
= control target key end

     0   :  { %6 = vsyncpa [#allocation3], 0  ;;  %s271_s0 = inlined_call_operand.hbm [shape: f32[2,4,256], index: 0, kind: input, shape index: {}]   ;;  %s272_s1 = inlined_call_operand.hbm [shape: f32[2,1,256], index: 1, kind: output, shape index: {}]  }
   0x1   :  { %7 = vsyncpa [#allocation4], 0  ;;  %s230_s6 = smov [#allocation2]   ;;  %s182_s10 = scalar_lea.hbm %s271_s0, 256 }
   0x2   :  { %s13_s7 = sshll.u32 %s230_s6, 4  ;;  %p183_p0 = scmp.ne.s32.totalorder %s271_s0, %s182_s10  ;;  %s14_s7 = int_to_ptr.vmem [resolvable:$true] %s13_s7 }
   0x3   :  { %p186_p1 = scmp.lt.u32.totalorder %s182_s10, %s271_s0 }
   0x5   :  { %p188_p2 = pnand %p186_p1, %p183_p0 }
   0x7   :  { %191 = shalt.err (!%p188_p2)
}
   0x8   :  { %s192_s15 = scalar_lea.vmem %s14_s7, 256  ;;  %p197_p4 = scmp.lt.s32.totalorder %s14_s7, %s14_s7 }
   0x9   :  { %p193_p3 = scmp.ne.s32.totalorder %s14_s7, %s192_s15  ;;  %p198_p5 = scmp.lt.s32.totalorder %s192_s15, %s192_s15 }
   0xb   :  { %p199_p6 = por %p198_p5, %p197_p4 }
   0xd   :  { %p200_p7 = pnand %p199_p6, %p193_p3 }
   0xf   :  { %203 = shalt.err (!%p200_p7)
}
  0x10   :  { %s231_s16 = smov 128   ;;  %s232_s17 = smov 8  }
  0x11   :  { %19 = dma.hbm_to_vmem [thread:$0]  %s271_s0, 256, %s14_s7, [#allocation3], %s231_s16, %s231_s16, %s232_s17  }
  0x12   :  { %226 = dma.done.wait [#allocation3], 256  }
  0x13   :  { %227 = vsyncadd [#allocation3], 4294967040  ;;  %vm31_vm0 = vcmask 1043456   ;;  %v23_v0 = vld [vmem:[#allocation2] sm:$0xff]  ;;  %v24_v1 = vld [vmem:[#allocation2 + $0x8] sm:$0xff]  ;;  %v72_v16 = vlaneseq  ;;  %s234_s0 = smov [#allocation5]  }
  0x14   :  { %v27_v2 = vcombine.high %v23_v0, %v23_v0  ;;  %v32_v3 = vsel %vm31_vm0, %v23_v0, -inf  ;;  %v28_v4 = vcombine.high %v24_v1, %v24_v1  ;;  %v46_v5 = vsel %vm31_vm0, %v24_v1, -inf  ;;  %s161_s20 = sshll.u32 %s234_s0, 4  ;;  %s162_s20 = int_to_ptr.vmem [resolvable:$true] %s161_s20 }
  0x15   :  { %v33_v6 = vrot.slane %v32_v3, 4  ;;  %v47_v7 = vrot.slane %v46_v5, 4  ;;  %v233_v14 = vmov 1966171168   ;;  %v73_v26 = vshrl.u32 %v72_v16, 7  ;;  %s204_s21 = scalar_lea.vmem %s162_s20, 64  ;;  %p209_p9 = scmp.lt.s32.totalorder %s162_s20, %s162_s20 }
  0x16   :  { %v39_v8 = vsel %vm31_vm0, %v27_v2, -inf  ;;  %v53_v9 = vsel %vm31_vm0, %v28_v4, -inf  ;;  %v70_v15 = vunpack.c.l.s4 %v233_v14  ;;  %vm102_vm1 = vcmp.lt.s32.totalorder %v72_v16, 256  ;;  %p205_p8 = scmp.ne.s32.totalorder %s162_s20, %s204_s21  ;;  %p210_p10 = scmp.lt.s32.totalorder %s204_s21, %s204_s21 }
  0x17   :  { %v34_v10 = vmax.f32 %v32_v3, %v33_v6  ;;  %v40_v11 = vrot.slane %v39_v8, 4  ;;  %v48_v12 = vmax.f32 %v46_v5, %v47_v7  ;;  %v54_v13 = vrot.slane %v53_v9, 4 }
  0x18   :  { %v71_v25 = vunpack.c.0.s8 %v70_v15  ;;  %p211_p11 = por %p210_p10, %p209_p9 }
  0x19   :  { %v35_v17 = vrot.slane %v34_v10, 2  ;;  %v41_v18 = vmax.f32 %v39_v8, %v40_v11  ;;  %v49_v19 = vrot.slane %v48_v12, 2  ;;  %v55_v20 = vmax.f32 %v53_v9, %v54_v13 }
  0x1a   :  { %v74_v36 = vsub.s32 %v71_v25, %v73_v26  ;;  %p212_p12 = pnand %p211_p11, %p205_p8 }
  0x1b   :  { %v36_v21 = vmax.f32 %v34_v10, %v35_v17  ;;  %v42_v22 = vrot.slane %v41_v18, 2  ;;  %v50_v23 = vmax.f32 %v48_v12, %v49_v19  ;;  %v56_v24 = vrot.slane %v55_v20, 2 }
  0x1d   :  { %v37_v27 = vrot.slane %v36_v21, 1  ;;  %v43_v28 = vmax.f32 %v41_v18, %v42_v22  ;;  %v51_v29 = vrot.slane %v50_v23, 1  ;;  %v57_v30 = vmax.f32 %v55_v20, %v56_v24 }
  0x1f   :  { %v38_v31 = vmax.f32 %v36_v21, %v37_v27  ;;  %v44_v32 = vrot.slane %v43_v28, 1  ;;  %v52_v33 = vmax.f32 %v50_v23, %v51_v29  ;;  %v58_v34 = vrot.slane %v57_v30, 1 }
  0x21   :  { %v45_v35 = vmax.f32 %v43_v28, %v44_v32  ;;  %v59_v37 = vmax.f32 %v57_v30, %v58_v34 }
  0x23   :  { %v68_v38 = vcombine.low %v38_v31, %v45_v35  ;;  %v83_v39 = vcombine.low %v52_v33, %v59_v37 }
  0x25   :  { %v75_v40 = vrot.slane %v68_v38, %v74_v36  ;;  %v90_v41 = vrot.slane %v83_v39, %v74_v36 }
  0x27   :  { %v82_v42 = vrot.slane %v75_v40, %v74_v36  ;;  %v97_v43 = vrot.slane %v90_v41, %v74_v36 }
  0x29   :  { %104 = vst.msk [vmem:[#allocation5] sm:$0x3] %vm102_vm1, %v82_v42  ;;  %105 = vst.msk [vmem:[#allocation5 + $0x2] sm:$0x3] %vm102_vm1, %v97_v43 }
  0x2a   :  { %215 = shalt.err (!%p212_p12)
}
  0x2b   :  { %s216_s24 = scalar_lea.hbm %s272_s1, 64 }
  0x2c   :  { %p217_p13 = scmp.ne.s32.totalorder %s272_s1, %s216_s24  ;;  %p220_p0 = scmp.lt.u32.totalorder %s216_s24, %s272_s1 }
  0x2e   :  { %p222_p1 = pnand %p220_p0, %p217_p13 }
  0x30   :  { %225 = shalt.err (!%p222_p1)
}
  0x31   :  { %s235_s29 = smov 32   ;;  %s236_s30 = smov 2  }
  0x32   :  { %167 = dma.vmem_to_hbm [thread:$0]  %s162_s20, 64, %s272_s1, [#allocation4], %s235_s29, %s235_s29, %s236_s30  }
  0x33   :  { %228 = dma.done.wait [#allocation4], 64  }
  0x34   :  { %229 = vsyncadd [#allocation4], 4294967232 }
  0x35   :  { %171 = vsyncpa [#allocation3], 1 }
  0x36   :  { %172 = vsyncpa [#allocation4], 1 }

</bundles_post_ra>
